<compile_context>
chip_gen: v6e
topology: v6e:2x2x1
jax: 0.10.0
libtpu: 0.0.40
codegen_flags: <defaults>
</compile_context>

<pallas_src>
import functools

import numpy as np
import jax
import jax.numpy as jnp
from jax.experimental import pallas as pl
from jax.experimental.pallas import tpu as pltpu

_PACK = 128  # batch tiles kept multiples of 128 (full sublane/lane occupancy)


def _round_up(x, m):
    return ((x + m - 1) // m) * m


def _value_mlp_kernel(x_ref, w1_ref, b1_ref, w2_ref, b2_ref, w3t_ref, b3_ref,
                      o_ref):
    # Layer 1: MXU matmul (bf16 or f32 operands, f32 accumulation) + bias + ReLU.
    x = x_ref[...].astype(w1_ref.dtype)
    h1 = jnp.dot(x, w1_ref[...], preferred_element_type=jnp.float32) + b1_ref[...]
    h1 = jnp.maximum(h1, 0.0)
    # Layer 2.
    h2 = jnp.dot(h1.astype(w2_ref.dtype), w2_ref[...],
                 preferred_element_type=jnp.float32) + b2_ref[...]
    h2 = jnp.maximum(h2, 0.0)
    # Layer 3: (H x 1) projection on VPU (multiply) + XLU (lane reduce), f32.
    # b3 comes from SMEM as a scalar; result is one value per batch row.
    v = jnp.sum(h2 * w3t_ref[...], axis=-1, keepdims=True) + b3_ref[0]  # (tb, 1)
    o_ref[...] = v.astype(o_ref.dtype)


@functools.partial(jax.jit, static_argnames=("tb", "dot_dtype"))
def value_func_forward(state, w1, b1, w2, b2, w3, b3, *, tb=512,
                       dot_dtype=jnp.bfloat16):
    """Fused 3-layer MLP value function. state: [B, S] f32 -> [B, 1] f32."""
    B, S = state.shape
    H = w1.shape[1]

    # ---- batch tiling ---------------------------------------------------
    tb_eff = min(tb, _round_up(B, _PACK))
    # v7x has two TensorCores: ensure the (parallel) batch grid has at least
    # two steps whenever B is large enough for two tiles.
    if B > _PACK and _round_up(B, tb_eff) // tb_eff < 2:
        tb_eff = _round_up(_round_up(B, _PACK) // 2, _PACK)
    Bp = _round_up(B, tb_eff)
    n_steps = Bp // tb_eff

    x = state.astype(jnp.float32)
    if Bp != B:                       # ragged batch tail only; feature dim unpadded
        x = jnp.pad(x, ((0, Bp - B), (0, 0)))

    w_dtype = jnp.float32 if dot_dtype is None else dot_dtype
    w1c = w1.astype(w_dtype)
    w2c = w2.astype(w_dtype)
    b1r = b1.reshape(1, H).astype(jnp.float32)
    b2r = b2.reshape(1, H).astype(jnp.float32)
    w3r = w3.reshape(1, H).astype(jnp.float32)   # (H,1) -> row for VPU broadcast-mul
    b3s = b3.reshape(1).astype(jnp.float32)      # SMEM scalar

    # ---- pipelining depth & VMEM budget ----------------------------------
    n_buf = min(3, max(2, n_steps))
    wb = np.dtype(w_dtype).itemsize
    lane = lambda n: _round_up(n, 128)
    est = (n_buf * tb_eff * lane(S) * 4           # x blocks (f32, lane-padded)
           + 2 * _round_up(S, 8) * lane(H) * wb   # W1 (double-buffered, resident)
           + 2 * H * lane(H) * wb                 # W2 (double-buffered, resident)
           + 3 * 2 * 8 * lane(H) * 4              # b1 / b2 / w3 rows
           + n_buf * tb_eff * 128 * 4             # (tb,1) output blocks (lane-padded)
           + 4 * tb_eff * lane(H) * 4)            # f32 intermediates headroom
    vmem_limit = int(min(32 * 2**20, max(4 * 2**20, 2 * est)))

    # Only deepen buffering when there are enough grid steps to benefit.
    deep = {"pipeline_mode": pl.Buffered(n_buf)} if n_buf > 2 else {}

    out = pl.pallas_call(
        _value_mlp_kernel,
        out_shape=jax.ShapeDtypeStruct((Bp, 1), jnp.float32),
        grid=(n_steps,),
        in_specs=[
            pl.BlockSpec((tb_eff, S), lambda i: (i, 0), **deep),  # x (streamed)
            pl.BlockSpec((S, H), lambda i: (0, 0)),               # W1 (resident)
            pl.BlockSpec((1, H), lambda i: (0, 0)),               # b1
            pl.BlockSpec((H, H), lambda i: (0, 0)),               # W2 (resident)
            pl.BlockSpec((1, H), lambda i: (0, 0)),                # b2
            pl.BlockSpec((1, H), lambda i: (0, 0)),                # W3 row
            pl.BlockSpec(memory_space=pltpu.MemorySpace.SMEM),     # b3 scalar
        ],
        out_specs=pl.BlockSpec((tb_eff, 1), lambda i: (i, 0), **deep),
        compiler_params=pltpu.CompilerParams(
            dimension_semantics=("parallel",),
            vmem_limit_bytes=vmem_limit),
    )(x, w1c, b1r, w2c, b2r, w3r, b3s)

    return out[:B]


def init_value_func_params(key, state_dim, hidden_size=256):
    """PyTorch nn.Linear default init: U(-1/sqrt(fan_in), 1/sqrt(fan_in))."""
    ks = jax.random.split(key, 6)

    def lin(kw, kb, fan_in, fan_out):
        bound = 1.0 / jnp.sqrt(jnp.float32(fan_in))
        w = jax.random.uniform(kw, (fan_in, fan_out), jnp.float32, -bound, bound)
        b = jax.random.uniform(kb, (fan_out,), jnp.float32, -bound, bound)
        return w, b

    w1, b1 = lin(ks[0], ks[1], state_dim, hidden_size)
    w2, b2 = lin(ks[2], ks[3], hidden_size, hidden_size)
    w3, b3 = lin(ks[4], ks[5], hidden_size, 1)
    return w1, b1, w2, b2, w3, b3


def value_func_reference(state, w1, b1, w2, b2, w3, b3):
    h1 = jnp.maximum(state @ w1 + b1, 0.0)
    h2 = jnp.maximum(h1 @ w2 + b2, 0.0)
    return h2 @ w3 + b3


if __name__ == "__main__":
    key = jax.random.PRNGKey(0)
    k_params, k_state = jax.random.split(key)

    batch = 2
    state_dim = 17        # deliberately not 8/128-aligned (K streamed unpadded)
    hidden_size = 32      # small hidden size consistent with the module

    params = init_value_func_params(k_params, state_dim, hidden_size)
    state = jax.random.normal(k_state, (batch, state_dim), jnp.float32)
    ref = value_func_reference(state, *params)

    # Exact f32 path: must match the f32 reference tightly.
    out_f32 = jax.block_until_ready(value_func_forward(state, *params, dot_dtype=None))
    assert out_f32.shape == (batch, 1), out_f32.shape
    assert jnp.allclose(out_f32, ref, atol=1e-5, rtol=1e-5), (out_f32, ref)

    # Default perf path: bf16 MXU operands with f32 accumulation (looser check).
    out_bf16 = jax.block_until_ready(value_func_forward(state, *params))
    assert out_bf16.shape == (batch, 1), out_bf16.shape
    assert jnp.allclose(out_bf16, ref, atol=1e-1, rtol=1e-1), (out_bf16, ref)

    print("KERNEL_OK")
</pallas_src>

<mosaic_0001>
module attributes {stable_mosaic.version = 11 : i64} {
  func.func @_value_mlp_kernel(%arg0: i32, %arg1: memref<128x17xf32, #tpu.memory_space<vmem>>, %arg2: memref<17x32xf32, #tpu.memory_space<vmem>>, %arg3: memref<1x32xf32, #tpu.memory_space<vmem>>, %arg4: memref<32x32xf32, #tpu.memory_space<vmem>>, %arg5: memref<1x32xf32, #tpu.memory_space<vmem>>, %arg6: memref<1x32xf32, #tpu.memory_space<vmem>>, %arg7: memref<1xf32, #tpu.memory_space<smem>>, %arg8: memref<128x1xf32, #tpu.memory_space<vmem>>) attributes {dimension_semantics = [#tpu.dimension_semantics<parallel>], iteration_bounds = array<i64: 1>, scalar_prefetch = 0 : i64, scratch_operands = 0 : i64, tpu.core_type = #tpu.core_type<tc>, window_params = [{transform_indices = @transform_0, window_bounds = array<i64: 128, 17>}, {pipeline_mode = #tpu.pipeline_mode<synchronous>, transform_indices = @transform_1, window_bounds = array<i64: 17, 32>}, {pipeline_mode = #tpu.pipeline_mode<synchronous>, transform_indices = @transform_2, window_bounds = array<i64: 1, 32>}, {pipeline_mode = #tpu.pipeline_mode<synchronous>, transform_indices = @transform_3, window_bounds = array<i64: 32, 32>}, {pipeline_mode = #tpu.pipeline_mode<synchronous>, transform_indices = @transform_4, window_bounds = array<i64: 1, 32>}, {pipeline_mode = #tpu.pipeline_mode<synchronous>, transform_indices = @transform_5, window_bounds = array<i64: 1, 32>}, {transform_indices = @transform_6, window_bounds = array<i64: 1>}, {transform_indices = @transform_7, window_bounds = array<i64: 128, 1>}]} {
    %c0 = arith.constant 0 : index
    %c0_0 = arith.constant 0 : index
    %0 = vector.load %arg1[%c0, %c0_0] : memref<128x17xf32, #tpu.memory_space<vmem>>, vector<128x17xf32>
    %c0_1 = arith.constant 0 : index
    %c0_2 = arith.constant 0 : index
    %1 = vector.load %arg2[%c0_1, %c0_2] : memref<17x32xf32, #tpu.memory_space<vmem>>, vector<17x32xf32>
    %cst = arith.constant dense<0.000000e+00> : vector<128x32xf32>
    %2 = tpu.matmul %0, %1, %cst {dimension_numbers = #tpu.dot_dimension_numbers<[1], [0], [0], [1], [0, 0, 1, 1], [], []>} : vector<128x17xf32>, vector<17x32xf32>, vector<128x32xf32> -> vector<128x32xf32>
    %c0_3 = arith.constant 0 : index
    %c0_4 = arith.constant 0 : index
    %3 = vector.load %arg3[%c0_3, %c0_4] : memref<1x32xf32, #tpu.memory_space<vmem>>, vector<1x32xf32>
    %4 = vector.broadcast %3 : vector<1x32xf32> to vector<128x32xf32>
    %5 = arith.addf %2, %4 : vector<128x32xf32>
    %cst_5 = arith.constant 0.000000e+00 : f32
    %6 = vector.broadcast %cst_5 : f32 to vector<128x32xf32>
    %7 = arith.maximumf %5, %6 : vector<128x32xf32>
    %c0_6 = arith.constant 0 : index
    %c0_7 = arith.constant 0 : index
    %8 = vector.load %arg4[%c0_6, %c0_7] : memref<32x32xf32, #tpu.memory_space<vmem>>, vector<32x32xf32>
    %cst_8 = arith.constant dense<0.000000e+00> : vector<128x32xf32>
    %9 = tpu.matmul %7, %8, %cst_8 {dimension_numbers = #tpu.dot_dimension_numbers<[1], [0], [0], [1], [0, 0, 1, 1], [], []>} : vector<128x32xf32>, vector<32x32xf32>, vector<128x32xf32> -> vector<128x32xf32>
    %c0_9 = arith.constant 0 : index
    %c0_10 = arith.constant 0 : index
    %10 = vector.load %arg5[%c0_9, %c0_10] : memref<1x32xf32, #tpu.memory_space<vmem>>, vector<1x32xf32>
    %11 = vector.broadcast %10 : vector<1x32xf32> to vector<128x32xf32>
    %12 = arith.addf %9, %11 : vector<128x32xf32>
    %cst_11 = arith.constant 0.000000e+00 : f32
    %13 = vector.broadcast %cst_11 : f32 to vector<128x32xf32>
    %14 = arith.maximumf %12, %13 : vector<128x32xf32>
    %c0_12 = arith.constant 0 : index
    %c0_13 = arith.constant 0 : index
    %15 = vector.load %arg6[%c0_12, %c0_13] : memref<1x32xf32, #tpu.memory_space<vmem>>, vector<1x32xf32>
    %16 = vector.broadcast %15 : vector<1x32xf32> to vector<128x32xf32>
    %17 = arith.mulf %14, %16 : vector<128x32xf32>
    %cst_14 = arith.constant dense<0.000000e+00> : vector<128xf32>
    %18 = vector.multi_reduction <add>, %17, %cst_14 [1] : vector<128x32xf32> to vector<128xf32>
    %19 = vector.shape_cast %18 : vector<128xf32> to vector<128x1xf32>
    %c0_15 = arith.constant 0 : index
    %20 = memref.load %arg7[%c0_15] : memref<1xf32, #tpu.memory_space<smem>>
    %21 = vector.broadcast %20 : f32 to vector<128x1xf32>
    %22 = arith.addf %19, %21 : vector<128x1xf32>
    %c0_16 = arith.constant 0 : index
    %c0_17 = arith.constant 0 : index
    %23 = vector.load %arg8[%c0_16, %c0_17] : memref<128x1xf32, #tpu.memory_space<vmem>>, vector<128x1xf32>
    tpu.vector_store %arg8[%c0_16, %c0_17], %22 {strides = array<i32>} : memref<128x1xf32, #tpu.memory_space<vmem>>, vector<128x1xf32>,
    return
  }
  func.func @transform_0(%arg0: i32) -> (i32, i32) {
    %c0_i32 = arith.constant 0 : i32
    %c0_i32_0 = arith.constant 0 : i32
    return %arg0, %c0_i32 : i32, i32
  }
  func.func @transform_1(%arg0: i32) -> (i32, i32) {
    %c0_i32 = arith.constant 0 : i32
    %c0_i32_0 = arith.constant 0 : i32
    %c0_i32_1 = arith.constant 0 : i32
    return %c0_i32, %c0_i32_0 : i32, i32
  }
  func.func @transform_2(%arg0: i32) -> (i32, i32) {
    %c0_i32 = arith.constant 0 : i32
    %c0_i32_0 = arith.constant 0 : i32
    %c0_i32_1 = arith.constant 0 : i32
    return %c0_i32, %c0_i32_0 : i32, i32
  }
  func.func @transform_3(%arg0: i32) -> (i32, i32) {
    %c0_i32 = arith.constant 0 : i32
    %c0_i32_0 = arith.constant 0 : i32
    %c0_i32_1 = arith.constant 0 : i32
    return %c0_i32, %c0_i32_0 : i32, i32
  }
  func.func @transform_4(%arg0: i32) -> (i32, i32) {
    %c0_i32 = arith.constant 0 : i32
    %c0_i32_0 = arith.constant 0 : i32
    %c0_i32_1 = arith.constant 0 : i32
    return %c0_i32, %c0_i32_0 : i32, i32
  }
  func.func @transform_5(%arg0: i32) -> (i32, i32) {
    %c0_i32 = arith.constant 0 : i32
    %c0_i32_0 = arith.constant 0 : i32
    %c0_i32_1 = arith.constant 0 : i32
    return %c0_i32, %c0_i32_0 : i32, i32
  }
  func.func @transform_6(%arg0: i32) -> i32 {
    %c0_i32 = arith.constant 0 : i32
    %c0_i32_0 = arith.constant 0 : i32
    return %c0_i32 : i32
  }
  func.func @transform_7(%arg0: i32) -> (i32, i32) {
    %c0_i32 = arith.constant 0 : i32
    %c0_i32_0 = arith.constant 0 : i32
    return %arg0, %c0_i32 : i32, i32
  }
}

</mosaic_0001>

<bundles_post_ra>
// kernel: value_func_forward.1
= control target key start
LH: loop header
LB: loop body
LE: loop exit
PB: predicated region body
PF: predicated region fallthrough
CT: control target
= control target key end

     0   :  { %vm102_vm0 = vcmask 1040384   ;;  %vm53_vm1 = vcmask 138240   ;;  %vm278_vm2 = vcmask 261120   ;;  %vm577_vm3 = vcmask 7168   ;;  %s1004_s1 = inlined_call_operand.vmem [shape: f32[17,32], index: 1, kind: input, shape index: {}]   ;;  %s1005_s0 = inlined_call_operand.vmem [shape: f32[128,17], index: 0, kind: input, shape index: {}]   ;;  %s1006_s3 = inlined_call_operand.vmem [shape: f32[32,32], index: 3, kind: input, shape index: {}]   ;;  %s1007_s2 = inlined_call_operand.vmem [shape: f32[1,32], index: 2, kind: input, shape index: {}]   ;;  %s1008_s4 = inlined_call_operand.vmem [shape: f32[1,32], index: 4, kind: input, shape index: {}]   ;;  %s1009_s5 = inlined_call_operand.vmem [shape: f32[1,32], index: 5, kind: input, shape index: {}]   ;;  %s1010_s6 = inlined_call_operand.<no memory space> [shape: f32[1], index: 6, kind: input, shape index: {}]   ;;  %s1011_s7 = inlined_call_operand.vmem [shape: f32[128,1], index: 7, kind: output, shape index: {}]  }
   0x1   :  { %v45_v0 = vld [vmem:[%s1004_s1 + $0x10] sm:$0x1]  ;;  %v44_v1 = vld [vmem:[%s1004_s1 + $0x8] sm:$0xff]  ;;  %v27_v2 = vld [vmem:[%s1005_s0] sm:$0xff] }
   0x2   :  { %673 = vmatprep.subr.msk.mxu0 %vm102_vm0, %v45_v0  ;;  %v43_v3 = vld [vmem:[%s1004_s1] sm:$0xff]  ;;  %679 = vmatprep.mubr.msk.f32.mxu0 %vm53_vm1, %v27_v2  ;;  %v28_v4 = vld [vmem:[%s1005_s0 + $0x8] sm:$0xff]  ;;  %v29_v5 = vld [vmem:[%s1005_s0 + $0x10] sm:$0xff] }
   0x3   :  { %674 = vmatpush3.msk.msra.mxu0 %vm102_vm0, %v45_v0  ;;  %v30_v6 = vld [vmem:[%s1005_s0 + $0x18] sm:$0xff]  ;;  %v31_v7 = vld [vmem:[%s1005_s0 + $0x20] sm:$0xff]  ;;  %v32_v8 = vld [vmem:[%s1005_s0 + $0x28] sm:$0xff] }
   0x4   :  { %675 = vmatprep.subr.mxu0 %v44_v1  ;;  %v33_v9 = vld [vmem:[%s1005_s0 + $0x30] sm:$0xff]  ;;  %v34_v10 = vld [vmem:[%s1005_s0 + $0x38] sm:$0xff]  ;;  %v35_v11 = vld [vmem:[%s1005_s0 + $0x40] sm:$0xff] }
   0x5   :  { %676 = vmatpush3.msra.mxu0 %v44_v1  ;;  %v36_v12 = vld [vmem:[%s1005_s0 + $0x48] sm:$0xff]  ;;  %v37_v13 = vld [vmem:[%s1005_s0 + $0x50] sm:$0xff]  ;;  %v38_v14 = vld [vmem:[%s1005_s0 + $0x58] sm:$0xff] }
   0x6   :  { %677 = vmatprep.subr.mxu0 %v43_v3  ;;  %v39_v15 = vld [vmem:[%s1005_s0 + $0x60] sm:$0xff]  ;;  %v40_v16 = vld [vmem:[%s1005_s0 + $0x68] sm:$0xff]  ;;  %v41_v17 = vld [vmem:[%s1005_s0 + $0x70] sm:$0xff] }
   0x7   :  { %678 = vmatpush3.msra.mxu0 %v43_v3  ;;  %v42_v18 = vld [vmem:[%s1005_s0 + $0x78] sm:$0xff]  ;;  %v269_v20 = vld [vmem:[%s1006_s3 + $0x10] sm:$0xff]  ;;  %v268_v21 = vld [vmem:[%s1006_s3 + $0x8] sm:$0xff] }
   0x8   :  { %680 = vmatmul.mubr.msk.f32.vlgmr.msra.gmra.mxu0 %vm53_vm1, %v28_v4  ;;  %v270_v19 = vld [vmem:[%s1006_s3 + $0x18] sm:$0xff]  ;;  %v267_v22 = vld [vmem:[%s1006_s3] sm:$0xff] }
   0x9   :  { %682 = vmatprep.mubr.msk.f32.mxu0 %vm53_vm1, %v29_v5  ;;  %703 = vmatprep.subr.mxu1 %v270_v19  ;;  %v598_v23 = vld [vmem:[%s1007_s2] ss:$0 sm:$0xff] }
   0xa   :  { %704 = vmatpush3.msra.mxu1 %v270_v19 }
   0xb   :  { %705 = vmatprep.subr.mxu1 %v269_v20 }
   0xc   :  { %683 = vmatmul.mubr.msk.f32.gmra.mxu0 %vm53_vm1, %v30_v6  ;;  %706 = vmatpush3.msra.mxu1 %v269_v20 }
   0xd   :  { %685 = vmatprep.mubr.msk.f32.mxu0 %vm53_vm1, %v31_v7  ;;  %707 = vmatprep.subr.mxu1 %v268_v21 }
   0xe   :  { %708 = vmatpush3.msra.mxu1 %v268_v21 }
   0xf   :  { %709 = vmatprep.subr.mxu1 %v267_v22 }
  0x10   :  { %686 = vmatmul.mubr.msk.f32.gmra.mxu0 %vm53_vm1, %v32_v8  ;;  %710 = vmatpush3.msra.mxu1 %v267_v22  ;;  %v882_v8 = vld [vmem:[%s1008_s4] ss:$0 sm:$0xff] }
  0x11   :  { %688 = vmatprep.mubr.msk.f32.mxu0 %vm53_vm1, %v33_v9 }
  0x14   :  { %689 = vmatmul.mubr.msk.f32.gmra.mxu0 %vm53_vm1, %v34_v10 }
  0x15   :  { %691 = vmatprep.mubr.msk.f32.mxu0 %vm53_vm1, %v35_v11 }
  0x18   :  { %692 = vmatmul.mubr.msk.f32.gmra.mxu0 %vm53_vm1, %v36_v12  ;;  %v888_v12 = vld [vmem:[%s1009_s5] ss:$0 sm:$0xff] }
  0x19   :  { %694 = vmatprep.mubr.msk.f32.mxu0 %vm53_vm1, %v37_v13 }
  0x1c   :  { %695 = vmatmul.mubr.msk.f32.gmra.mxu0 %vm53_vm1, %v38_v14 }
  0x1d   :  { %697 = vmatprep.mubr.msk.f32.mxu0 %vm53_vm1, %v39_v15 }
  0x20   :  { %698 = vmatmul.mubr.msk.f32.gmra.mxu0 %vm53_vm1, %v40_v16 }
  0x21   :  { %700 = vmatprep.mubr.msk.f32.mxu0 %vm53_vm1, %v41_v17 }
  0x24   :  { %701 = vmatmul.mubr.msk.f32.gmra.mxu0 %vm53_vm1, %v42_v18 }
  0xc8   :  { %v681_v24 = vpop.f32.mrf.mxu0 }
  0xc9   :  { %v178_v25 = vadd.f32 %v681_v24, %v598_v23 }
  0xca   :  { %v172_v26 = vpop.f32.mrf.mxu0 }
  0xcb   :  { %v173_v27 = vadd.f32 %v598_v23, %v172_v26  ;;  %v252_v30 = vmax.f32 %v178_v25, 0.0 }
  0xcc   :  { %v684_v28 = vpop.f32.mrf.mxu0 }
  0xcd   :  { %v251_v29 = vmax.f32 %v173_v27, 0.0  ;;  %v188_v31 = vadd.f32 %v684_v28, %v598_v23 }
  0xce   :  { %v182_v32 = vpop.f32.mrf.mxu0 }
  0xcf   :  { %v183_v33 = vadd.f32 %v598_v23, %v182_v32  ;;  %711 = vmatprep.mubr.msk.f32.mxu1 %vm278_vm2, %v251_v29  ;;  %v254_v37 = vmax.f32 %v188_v31, 0.0 }
  0xd0   :  { %v687_v34 = vpop.f32.mrf.mxu0  ;;  %712 = vmatmul.mubr.msk.f32.vlgmr.msra.gmra.mxu1 %vm278_vm2, %v252_v30 }
  0xd1   :  { %v253_v35 = vmax.f32 %v183_v33, 0.0  ;;  %v198_v36 = vadd.f32 %v687_v34, %v598_v23 }
  0xd2   :  { %v192_v38 = vpop.f32.mrf.mxu0 }
  0xd3   :  { %v193_v39 = vadd.f32 %v598_v23, %v192_v38  ;;  %714 = vmatprep.mubr.msk.f32.mxu1 %vm278_vm2, %v253_v35  ;;  %v256_v40 = vmax.f32 %v198_v36, 0.0 }
  0xd4   :  { %v690_v41 = vpop.f32.mrf.mxu0  ;;  %715 = vmatmul.mubr.msk.f32.gmra.mxu1 %vm278_vm2, %v254_v37 }
  0xd5   :  { %v255_v42 = vmax.f32 %v193_v39, 0.0  ;;  %v208_v43 = vadd.f32 %v690_v41, %v598_v23 }
  0xd6   :  { %v202_v44 = vpop.f32.mrf.mxu0 }
  0xd7   :  { %v203_v45 = vadd.f32 %v598_v23, %v202_v44  ;;  %717 = vmatprep.mubr.msk.f32.mxu1 %vm278_vm2, %v255_v42  ;;  %v258_v46 = vmax.f32 %v208_v43, 0.0 }
  0xd8   :  { %v693_v47 = vpop.f32.mrf.mxu0  ;;  %718 = vmatmul.mubr.msk.f32.gmra.mxu1 %vm278_vm2, %v256_v40 }
  0xd9   :  { %v257_v48 = vmax.f32 %v203_v45, 0.0  ;;  %v218_v49 = vadd.f32 %v693_v47, %v598_v23 }
  0xda   :  { %v212_v50 = vpop.f32.mrf.mxu0 }
  0xdb   :  { %v213_v51 = vadd.f32 %v598_v23, %v212_v50  ;;  %720 = vmatprep.mubr.msk.f32.mxu1 %vm278_vm2, %v257_v48  ;;  %v260_v52 = vmax.f32 %v218_v49, 0.0 }
  0xdc   :  { %v696_v53 = vpop.f32.mrf.mxu0  ;;  %721 = vmatmul.mubr.msk.f32.gmra.mxu1 %vm278_vm2, %v258_v46 }
  0xdd   :  { %v259_v54 = vmax.f32 %v213_v51, 0.0  ;;  %v228_v55 = vadd.f32 %v696_v53, %v598_v23 }
  0xde   :  { %v222_v56 = vpop.f32.mrf.mxu0 }
  0xdf   :  { %v223_v57 = vadd.f32 %v598_v23, %v222_v56  ;;  %723 = vmatprep.mubr.msk.f32.mxu1 %vm278_vm2, %v259_v54  ;;  %v262_v58 = vmax.f32 %v228_v55, 0.0 }
  0xe0   :  { %v699_v59 = vpop.f32.mrf.mxu0  ;;  %724 = vmatmul.mubr.msk.f32.gmra.mxu1 %vm278_vm2, %v260_v52 }
  0xe1   :  { %v261_v60 = vmax.f32 %v223_v57, 0.0  ;;  %v238_v61 = vadd.f32 %v699_v59, %v598_v23 }
  0xe2   :  { %v232_v62 = vpop.f32.mrf.mxu0 }
  0xe3   :  { %v233_v63 = vadd.f32 %v598_v23, %v232_v62  ;;  %726 = vmatprep.mubr.msk.f32.mxu1 %vm278_vm2, %v261_v60  ;;  %v264_v0 = vmax.f32 %v238_v61, 0.0 }
  0xe4   :  { %v702_v1 = vpop.f32.mrf.mxu0  ;;  %727 = vmatmul.mubr.msk.f32.gmra.mxu1 %vm278_vm2, %v262_v58 }
  0xe5   :  { %v263_v2 = vmax.f32 %v233_v63, 0.0  ;;  %v248_v3 = vadd.f32 %v702_v1, %v598_v23 }
  0xe6   :  { %v242_v4 = vpop.f32.mrf.mxu0 }
  0xe7   :  { %v243_v5 = vadd.f32 %v598_v23, %v242_v4  ;;  %729 = vmatprep.mubr.msk.f32.mxu1 %vm278_vm2, %v263_v2  ;;  %v266_v6 = vmax.f32 %v248_v3, 0.0 }
  0xe8   :  { %730 = vmatmul.mubr.msk.f32.gmra.mxu1 %vm278_vm2, %v264_v0 }
  0xe9   :  { %v265_v7 = vmax.f32 %v243_v5, 0.0 }
  0xeb   :  { %732 = vmatprep.mubr.msk.f32.mxu1 %vm278_vm2, %v265_v7 }
  0xec   :  { %733 = vmatmul.mubr.msk.f32.gmra.mxu1 %vm278_vm2, %v266_v6 }
 0x190   :  { %v713_v9 = vpop.f32.mrf.mxu1 }
 0x191   :  { %v399_v10 = vadd.f32 %v713_v9, %v882_v8 }
 0x192   :  { %v393_v11 = vpop.f32.mrf.mxu1 }
 0x193   :  { %v473_v13 = vmax.f32 %v399_v10, 0.0  ;;  %v394_v14 = vadd.f32 %v882_v8, %v393_v11 }
 0x194   :  { %v716_v15 = vpop.f32.mrf.mxu1 }
 0x195   :  { %v472_v16 = vmax.f32 %v394_v14, 0.0  ;;  %v409_v17 = vadd.f32 %v716_v15, %v882_v8  ;;  %v496_v18 = vmul.f32 %v888_v12, %v473_v13 }
 0x196   :  { %v403_v19 = vpop.f32.mrf.mxu1 }
 0x197   :  { %v475_v20 = vmax.f32 %v409_v17, 0.0  ;;  %v404_v21 = vadd.f32 %v882_v8, %v403_v19  ;;  %v514_v22 = vsel %vm278_vm2, %v496_v18, 0.0  ;;  %v495_v23 = vmul.f32 %v888_v12, %v472_v16 }
 0x198   :  { %515 = vadd.xlane.f32.xlu0 %v514_v22  ;;  %v719_v24 = vpop.f32.mrf.mxu1 }
 0x199   :  { %v474_v25 = vmax.f32 %v404_v21, 0.0  ;;  %v419_v26 = vadd.f32 %v719_v24, %v882_v8  ;;  %v498_v27 = vmul.f32 %v888_v12, %v475_v20  ;;  %v511_v29 = vsel %vm278_vm2, %v495_v23, 0.0 }
 0x19a   :  { %v413_v28 = vpop.f32.mrf.mxu1 }
 0x19b   :  { %v477_v30 = vmax.f32 %v419_v26, 0.0  ;;  %v414_v31 = vadd.f32 %v882_v8, %v413_v28  ;;  %v520_v32 = vsel %vm278_vm2, %v498_v27, 0.0  ;;  %v497_v33 = vmul.f32 %v888_v12, %v474_v25 }
 0x19c   :  { %521 = vadd.xlane.f32.xlu1 %v520_v32  ;;  %v722_v34 = vpop.f32.mrf.mxu1  ;;  %512 = vadd.xlane.f32.xlu0 %v511_v29  ;;  %v560_v27 = vstv %s1010_s6 }
 0x19d   :  { %v476_v35 = vmax.f32 %v414_v31, 0.0  ;;  %v429_v36 = vadd.f32 %v722_v34, %v882_v8  ;;  %v517_v38 = vsel %vm278_vm2, %v497_v33, 0.0  ;;  %v500_v42 = vmul.f32 %v888_v12, %v477_v30 }
 0x19e   :  { %v423_v37 = vpop.f32.mrf.mxu1 }
 0x19f   :  { %v479_v39 = vmax.f32 %v429_v36, 0.0  ;;  %v424_v40 = vadd.f32 %v882_v8, %v423_v37  ;;  %v499_v41 = vmul.f32 %v888_v12, %v476_v35  ;;  %v526_v51 = vsel %vm278_vm2, %v500_v42, 0.0 }
 0x1a0   :  { %v725_v43 = vpop.f32.mrf.mxu1  ;;  %518 = vadd.xlane.f32.xlu1 %v517_v38 }
 0x1a1   :  { %v478_v44 = vmax.f32 %v424_v40, 0.0  ;;  %v439_v45 = vadd.f32 %v725_v43, %v882_v8  ;;  %v523_v46 = vsel %vm278_vm2, %v499_v41, 0.0  ;;  %v502_v48 = vmul.f32 %v888_v12, %v479_v39 }
 0x1a2   :  { %v433_v47 = vpop.f32.mrf.mxu1  ;;  %524 = vadd.xlane.f32.xlu0 %v523_v46 }
 0x1a3   :  { %v481_v49 = vmax.f32 %v439_v45, 0.0  ;;  %v434_v50 = vadd.f32 %v882_v8, %v433_v47  ;;  %v501_v52 = vmul.f32 %v888_v12, %v478_v44  ;;  %v532_v58 = vsel %vm278_vm2, %v502_v48, 0.0 }
 0x1a4   :  { %v728_v53 = vpop.f32.mrf.mxu1  ;;  %527 = vadd.xlane.f32.xlu1 %v526_v51 }
 0x1a5   :  { %v480_v54 = vmax.f32 %v434_v50, 0.0  ;;  %v449_v55 = vadd.f32 %v728_v53, %v882_v8  ;;  %v529_v56 = vsel %vm278_vm2, %v501_v52, 0.0  ;;  %v504_v62 = vmul.f32 %v888_v12, %v481_v49 }
 0x1a6   :  { %v443_v57 = vpop.f32.mrf.mxu1  ;;  %530 = vadd.xlane.f32.xlu0 %v529_v56 }
 0x1a7   :  { %v483_v59 = vmax.f32 %v449_v55, 0.0  ;;  %v444_v60 = vadd.f32 %v882_v8, %v443_v57  ;;  %v503_v61 = vmul.f32 %v888_v12, %v480_v54  ;;  %v538_v7 = vsel %vm278_vm2, %v504_v62, 0.0 }
 0x1a8   :  { %v731_v63 = vpop.f32.mrf.mxu1  ;;  %533 = vadd.xlane.f32.xlu1 %v532_v58 }
 0x1a9   :  { %v482_v0 = vmax.f32 %v444_v60, 0.0  ;;  %v459_v1 = vadd.f32 %v731_v63, %v882_v8  ;;  %v535_v2 = vsel %vm278_vm2, %v503_v61, 0.0  ;;  %v506_v4 = vmul.f32 %v888_v12, %v483_v59 }
 0x1aa   :  { %v453_v3 = vpop.f32.mrf.mxu1  ;;  %536 = vadd.xlane.f32.xlu0 %v535_v2 }
 0x1ab   :  { %v485_v5 = vmax.f32 %v459_v1, 0.0  ;;  %v454_v6 = vadd.f32 %v882_v8, %v453_v3  ;;  %v505_v9 = vmul.f32 %v888_v12, %v482_v0  ;;  %v544_v16 = vsel %vm278_vm2, %v506_v4, 0.0 }
 0x1ac   :  { %v734_v10 = vpop.f32.mrf.mxu1  ;;  %539 = vadd.xlane.f32.xlu1 %v538_v7 }
 0x1ad   :  { %v484_v11 = vmax.f32 %v454_v6, 0.0  ;;  %v469_v13 = vadd.f32 %v734_v10, %v882_v8  ;;  %v541_v14 = vsel %vm278_vm2, %v505_v9, 0.0  ;;  %v508_v20 = vmul.f32 %v888_v12, %v485_v5 }
 0x1ae   :  { %v463_v15 = vpop.f32.mrf.mxu1  ;;  %542 = vadd.xlane.f32.xlu0 %v541_v14 }
 0x1af   :  { %v487_v17 = vmax.f32 %v469_v13, 0.0  ;;  %v464_v18 = vadd.f32 %v882_v8, %v463_v15  ;;  %v507_v19 = vmul.f32 %v888_v12, %v484_v11  ;;  %v550_v23 = vsel %vm278_vm2, %v508_v20, 0.0 }
 0x1b0   :  { %545 = vadd.xlane.f32.xlu1 %v544_v16 }
 0x1b1   :  { %v486_v21 = vmax.f32 %v464_v18, 0.0  ;;  %v547_v22 = vsel %vm278_vm2, %v507_v19, 0.0  ;;  %v510_v25 = vmul.f32 %v888_v12, %v487_v17 }
 0x1b2   :  { %548 = vadd.xlane.f32.xlu0 %v547_v22 }
 0x1b3   :  { %v509_v24 = vmul.f32 %v888_v12, %v486_v21  ;;  %v556_v8 = vsel %vm278_vm2, %v510_v25, 0.0 }
 0x1b4   :  { %551 = vadd.xlane.f32.xlu1 %v550_v23 }
 0x1b5   :  { %v553_v26 = vsel %vm278_vm2, %v509_v24, 0.0 }
 0x1b6   :  { %554 = vadd.xlane.f32.xlu0 %v553_v26 }
 0x1b8   :  { %557 = vadd.xlane.f32.xlu1 %v556_v8 }
 0x221   :  { %v516_v28 = vpop.xlane.xlu0 %515 }
 0x222   :  { %v562_v29 = vadd.f32 %v560_v27, %v516_v28 }
 0x224   :  { %579 = vst.msk [vmem:[%s1011_s7 + $0x8] sm:$0xff] %vm577_vm3, %v562_v29 }
 0x225   :  { %v522_v12 = vpop.xlane.xlu1 %521  ;;  %v513_v30 = vpop.xlane.xlu0 %512 }
 0x226   :  { %v564_v31 = vadd.f32 %v560_v27, %v522_v12  ;;  %v561_v32 = vadd.f32 %v560_v27, %v513_v30 }
 0x228   :  { %581 = vst.msk [vmem:[%s1011_s7 + $0x18] sm:$0xff] %vm577_vm3, %v564_v31  ;;  %578 = vst.msk [vmem:[%s1011_s7] sm:$0xff] %vm577_vm3, %v561_v32 }
 0x229   :  { %v519_v33 = vpop.xlane.xlu1 %518 }
 0x22a   :  { %v563_v34 = vadd.f32 %v560_v27, %v519_v33 }
 0x22b   :  { %v525_v35 = vpop.xlane.xlu0 %524 }
 0x22c   :  { %580 = vst.msk [vmem:[%s1011_s7 + $0x10] sm:$0xff] %vm577_vm3, %v563_v34  ;;  %v565_v36 = vadd.f32 %v560_v27, %v525_v35 }
 0x22d   :  { %v528_v37 = vpop.xlane.xlu1 %527 }
 0x22e   :  { %582 = vst.msk [vmem:[%s1011_s7 + $0x20] sm:$0xff] %vm577_vm3, %v565_v36  ;;  %v566_v38 = vadd.f32 %v560_v27, %v528_v37 }
 0x22f   :  { %v531_v39 = vpop.xlane.xlu0 %530 }
 0x230   :  { %583 = vst.msk [vmem:[%s1011_s7 + $0x28] sm:$0xff] %vm577_vm3, %v566_v38  ;;  %v567_v40 = vadd.f32 %v560_v27, %v531_v39 }
 0x231   :  { %v534_v41 = vpop.xlane.xlu1 %533 }
 0x232   :  { %584 = vst.msk [vmem:[%s1011_s7 + $0x30] sm:$0xff] %vm577_vm3, %v567_v40  ;;  %v568_v42 = vadd.f32 %v560_v27, %v534_v41 }
 0x233   :  { %v537_v43 = vpop.xlane.xlu0 %536 }
 0x234   :  { %585 = vst.msk [vmem:[%s1011_s7 + $0x38] sm:$0xff] %vm577_vm3, %v568_v42  ;;  %v569_v44 = vadd.f32 %v560_v27, %v537_v43 }
 0x235   :  { %v540_v45 = vpop.xlane.xlu1 %539 }
 0x236   :  { %586 = vst.msk [vmem:[%s1011_s7 + $0x40] sm:$0xff] %vm577_vm3, %v569_v44  ;;  %v570_v46 = vadd.f32 %v560_v27, %v540_v45 }
 0x237   :  { %v543_v47 = vpop.xlane.xlu0 %542 }
 0x238   :  { %587 = vst.msk [vmem:[%s1011_s7 + $0x48] sm:$0xff] %vm577_vm3, %v570_v46  ;;  %v571_v48 = vadd.f32 %v560_v27, %v543_v47 }
 0x239   :  { %v546_v49 = vpop.xlane.xlu1 %545 }
 0x23a   :  { %588 = vst.msk [vmem:[%s1011_s7 + $0x50] sm:$0xff] %vm577_vm3, %v571_v48  ;;  %v572_v50 = vadd.f32 %v560_v27, %v546_v49 }
 0x23b   :  { %v549_v51 = vpop.xlane.xlu0 %548 }
 0x23c   :  { %589 = vst.msk [vmem:[%s1011_s7 + $0x58] sm:$0xff] %vm577_vm3, %v572_v50  ;;  %v573_v52 = vadd.f32 %v560_v27, %v549_v51 }
 0x23d   :  { %v552_v53 = vpop.xlane.xlu1 %551 }
 0x23e   :  { %590 = vst.msk [vmem:[%s1011_s7 + $0x60] sm:$0xff] %vm577_vm3, %v573_v52  ;;  %v574_v54 = vadd.f32 %v560_v27, %v552_v53 }
 0x23f   :  { %v555_v55 = vpop.xlane.xlu0 %554 }
 0x240   :  { %591 = vst.msk [vmem:[%s1011_s7 + $0x68] sm:$0xff] %vm577_vm3, %v574_v54  ;;  %v575_v56 = vadd.f32 %v560_v27, %v555_v55 }
 0x241   :  { %v558_v57 = vpop.xlane.xlu1 %557 }
 0x242   :  { %592 = vst.msk [vmem:[%s1011_s7 + $0x70] sm:$0xff] %vm577_vm3, %v575_v56  ;;  %v576_v58 = vadd.f32 %v560_v27, %v558_v57 }
 0x244   :  { %593 = vst.msk [vmem:[%s1011_s7 + $0x78] sm:$0xff] %vm577_vm3, %v576_v58 }

</bundles_post_ra>
